<compile_context>
chip_gen: v6e
topology: v6e:2x2x1
jax: 0.10.0
libtpu: 0.0.40
codegen_flags: <defaults>
</compile_context>

<pallas_src>
import functools

import jax
import jax.numpy as jnp
from jax.experimental import pallas as pl
from jax.experimental.pallas import tpu as pltpu


_LANE = 128
_TARGET_BLOCK_BYTES = 4 * 1024 * 1024      # ~4 MiB blocks: amortizes step overhead


def _round_up(n, m):
    return ((n + m - 1) // m) * m


@functools.lru_cache(maxsize=None)
def _vmem_budget():
    """(vmem_limit_bytes, fused per-image slab gate), derived per generation."""
    cap = 128 * 1024 * 1024
    try:
        cap = int(pltpu.get_tpu_info().vmem_capacity_bytes)
    except Exception:
        pass                                   # fall back to 128 MiB assumption
    vmem_limit = (cap * 3) // 4                # ~75% of physical VMEM
    # Fused path costs ~4x the block (double-buffered in + out) + tiny weights.
    fused_gate = max(1 << 20, (vmem_limit - (2 << 20)) // 4)
    return vmem_limit, fused_gate


# ----------------------------------------------------------------------------
# Fused single-pass kernel: one (bt, C, HW) block per grid step; x read once.
# ----------------------------------------------------------------------------
def _ca_fused_kernel(x_ref, w1_ref, w2_ref, o_ref, *, inv_hw, use_mxu, upcast):
    # x_ref: (bt, C, HW) native dtype; w1: (Cr, C); w2: (C, Cr)
    x = x_ref[...]

    # Global average pool over the spatial (lane) axis; f32 accumulation.
    y = jnp.sum(x, axis=-1, dtype=jnp.float32) * inv_hw              # (bt, C)

    w1 = w1_ref[...].astype(jnp.float32)                             # (Cr, C)
    w2 = w2_ref[...].astype(jnp.float32)                             # (C, Cr)
    if use_mxu:
        # Large bt*C: real MXU matmuls (vector-extended slot is free) instead of
        # materializing (bt, Cr, C) f32 intermediates on the VPU.
        h = jnp.maximum(jnp.dot(y, w1.T, preferred_element_type=jnp.float32), 0.0)
        s = jax.nn.sigmoid(jnp.dot(h, w2.T, preferred_element_type=jnp.float32))
    else:
        # Tiny C/bt: keep the excite on the VPU/XLU; N=1 matmuls would put the
        # MXU push/pop latency on the critical path for ~zero FLOPs.
        h = jnp.maximum(jnp.sum(w1[None, :, :] * y[:, None, :], axis=-1), 0.0)
        s = jax.nn.sigmoid(jnp.sum(w2[None, :, :] * h[:, None, :], axis=-1))

    if upcast:
        # Sub-f32 inputs: multiply in f32 to match the reference numerics.
        o_ref[...] = (x.astype(jnp.float32) * s[:, :, None]).astype(o_ref.dtype)
    else:
        o_ref[...] = x * s[:, :, None].astype(o_ref.dtype)


def _ca_layer_fused(x_nchw, w1, w2, vmem_limit):
    B, C, H, W = x_nchw.shape
    Cr = w1.shape[0]
    HW = H * W
    itemsize = jnp.dtype(x_nchw.dtype).itemsize

    x = x_nchw.reshape(B, C, HW)               # no padding: block dims == array dims

    # Pack several images per grid step when one (C, HW) slab is tiny so DMAs
    # hit the ~4 MiB sweet spot, but keep >= 2 parallel grid steps when B >= 2
    # so both v7x TensorCores get fed.
    slab = C * HW * itemsize
    bt = max(1, min(B, _TARGET_BLOCK_BYTES // max(slab, 1)))
    if B >= 2:
        bt = min(bt, max(1, B // 2))
    while B % bt:
        bt -= 1

    use_mxu = (C >= 256) or (bt >= 8)
    upcast = itemsize < 4

    kernel = functools.partial(_ca_fused_kernel, inv_hw=1.0 / HW,
                               use_mxu=use_mxu, upcast=upcast)
    out = pl.pallas_call(
        kernel,
        out_shape=jax.ShapeDtypeStruct((B, C, HW), x.dtype),
        grid_spec=pltpu.PrefetchScalarGridSpec(
            num_scalar_prefetch=0,
            grid=(B // bt,),
            in_specs=[
                pl.BlockSpec((bt, C, HW), lambda b: (b, 0, 0)),
                pl.BlockSpec((Cr, C), lambda b: (0, 0)),
                pl.BlockSpec((C, Cr), lambda b: (0, 0)),
            ],
            out_specs=pl.BlockSpec((bt, C, HW), lambda b: (b, 0, 0)),
        ),
        compiler_params=pltpu.CompilerParams(
            dimension_semantics=("parallel",),
            vmem_limit_bytes=vmem_limit),
    )(x, w1, w2)

    return out.reshape(B, C, H, W)


# ----------------------------------------------------------------------------
# Tiled two-pass path: streaming reduce -> streaming (excite + scale).
# ----------------------------------------------------------------------------
def _ca_reduce_kernel(x_ref, sum_ref, *, hw, tile, ragged):
    # x_ref: (1, C, t); sum_ref: (1, C, 1) f32 accumulator across the tile axis.
    j = pl.program_id(1)

    @pl.when(j == 0)
    def _():
        sum_ref[...] = jnp.zeros_like(sum_ref)

    x = x_ref[...]
    if ragged:
        # Last tile overruns HW: OOB lanes hold unspecified data -> zero them.
        lane = jax.lax.broadcasted_iota(jnp.int32, x.shape, dimension=2)
        x = jnp.where(lane < hw - j * tile, x, 0)
    sum_ref[...] += jnp.sum(x, axis=-1, keepdims=True, dtype=jnp.float32)


def _ca_scale_kernel(sum_ref, w1_ref, w2_ref, x_ref, o_ref, *, inv_hw, upcast):
    # sum_ref: (1, C, 1) f32; w1: (Cr, C); w2: (C, Cr); x/o: (1, C, t) native.
    # Squeeze-excite recomputed per tile on the VPU (~2*C*Cr flops, hidden
    # under the tile DMA) so there is no XLA stage between the two passes.
    y = sum_ref[...][:, :, 0] * inv_hw                                # (1, C)
    w1 = w1_ref[...].astype(jnp.float32)                              # (Cr, C)
    w2 = w2_ref[...].astype(jnp.float32)                              # (C, Cr)
    h = jnp.maximum(jnp.sum(w1[None, :, :] * y[:, None, :], axis=-1), 0.0)
    s = jax.nn.sigmoid(jnp.sum(w2[None, :, :] * h[:, None, :], axis=-1))

    x = x_ref[...]
    if upcast:
        o_ref[...] = (x.astype(jnp.float32) * s[:, :, None]).astype(o_ref.dtype)
    else:
        o_ref[...] = x * s[:, :, None].astype(o_ref.dtype)
    # Edge stores past HW on the last tile are masked by Pallas.


def _ca_layer_tiled(x_nchw, w1, w2, vmem_limit, spatial_tile=None):
    B, C, H, W = x_nchw.shape
    Cr = w1.shape[0]
    HW = H * W
    itemsize = jnp.dtype(x_nchw.dtype).itemsize

    # 128-aligned spatial tile sized to ~_TARGET_BLOCK_BYTES per (C, t) block.
    if spatial_tile is None:
        t = max(_LANE, (_TARGET_BLOCK_BYTES // (C * itemsize)) // _LANE * _LANE)
    else:
        assert spatial_tile % _LANE == 0, "spatial_tile must be a multiple of 128"
        t = spatial_tile
    t = min(t, _round_up(HW, _LANE))
    n_t = pl.cdiv(HW, t)
    ragged = (HW % t) != 0
    upcast = itemsize < 4

    x = x_nchw.reshape(B, C, HW)               # no padding; edge tile handled in-kernel

    # Pass 1: per-(batch, channel) sums, accumulated across 'arbitrary' HW tiles.
    sums = pl.pallas_call(
        functools.partial(_ca_reduce_kernel, hw=HW, tile=t, ragged=ragged),
        out_shape=jax.ShapeDtypeStruct((B, C, 1), jnp.float32),
        grid_spec=pltpu.PrefetchScalarGridSpec(
            num_scalar_prefetch=0,
            grid=(B, n_t),
            in_specs=[pl.BlockSpec((1, C, t), lambda b, j: (b, 0, j))],
            out_specs=pl.BlockSpec((1, C, 1), lambda b, j: (b, 0, 0)),
        ),
        compiler_params=pltpu.CompilerParams(
            dimension_semantics=("parallel", "arbitrary"),
            vmem_limit_bytes=vmem_limit),
    )(x)

    # Pass 2: re-stream the tiles; excite + scale fused in-kernel, fully parallel.
    out = pl.pallas_call(
        functools.partial(_ca_scale_kernel, inv_hw=1.0 / HW, upcast=upcast),
        out_shape=jax.ShapeDtypeStruct((B, C, HW), x.dtype),
        grid_spec=pltpu.PrefetchScalarGridSpec(
            num_scalar_prefetch=0,
            grid=(B, n_t),
            in_specs=[
                pl.BlockSpec((1, C, 1), lambda b, j: (b, 0, 0)),
                pl.BlockSpec((Cr, C), lambda b, j: (0, 0)),
                pl.BlockSpec((C, Cr), lambda b, j: (0, 0)),
                pl.BlockSpec((1, C, t), lambda b, j: (b, 0, j)),
            ],
            out_specs=pl.BlockSpec((1, C, t), lambda b, j: (b, 0, j)),
        ),
        compiler_params=pltpu.CompilerParams(
            dimension_semantics=("parallel", "parallel"),
            vmem_limit_bytes=vmem_limit),
    )(sums, w1, w2, x)

    return out.reshape(B, C, H, W)


# ----------------------------------------------------------------------------
# Public wrapper.
# ----------------------------------------------------------------------------
def ca_layer(x_nchw, w1, w2, *, mode="auto", spatial_tile=None):
    """Channel-attention forward.

    x_nchw: (B, C, H, W); w1: (C//r, C); w2: (C, C//r) — 1x1 conv weights squeezed.
    mode: "auto" uses the single-pass fused kernel (x read once) whenever a
    per-image (C, HW) slab fits the generation-dependent VMEM gate, else the
    tiled two-pass streaming path.
    """
    _, C, H, W = x_nchw.shape
    itemsize = jnp.dtype(x_nchw.dtype).itemsize
    vmem_limit, fused_gate = _vmem_budget()
    if mode == "auto":
        slab = C * H * W * itemsize
        mode = "fused" if slab <= fused_gate else "tiled"
    if mode == "fused":
        return _ca_layer_fused(x_nchw, w1, w2, vmem_limit)
    return _ca_layer_tiled(x_nchw, w1, w2, vmem_limit, spatial_tile=spatial_tile)


def ca_layer_ref(x, w1, w2):
    """Pure-JAX reference mirroring the PyTorch forward."""
    y = jnp.mean(x.astype(jnp.float32), axis=(2, 3), keepdims=True)           # (B,C,1,1)
    h = jnp.maximum(jnp.einsum('oc,bcxy->boxy', w1.astype(jnp.float32), y), 0.0)
    s = jax.nn.sigmoid(jnp.einsum('co,boxy->bcxy', w2.astype(jnp.float32), h))
    return (x.astype(jnp.float32) * s).astype(x.dtype)


if __name__ == "__main__":
    B, C, H, W = 2, 32, 16, 16
    reduction = 16
    Cr = C // reduction

    key = jax.random.PRNGKey(0)
    kx, k1, k2, kx2 = jax.random.split(key, 4)

    x = jax.random.normal(kx, (B, C, H, W), dtype=jnp.float32)
    # Conv2d(C, C//r, 1, bias=False).weight is (C//r, C, 1, 1) -> squeeze
    w1 = jax.random.normal(k1, (Cr, C), dtype=jnp.float32) * 0.1
    # Conv2d(C//r, C, 1, bias=False).weight is (C, C//r, 1, 1) -> squeeze
    w2 = jax.random.normal(k2, (C, Cr), dtype=jnp.float32) * 0.1

    ref = jax.block_until_ready(ca_layer_ref(x, w1, w2))

    # Fused single-pass path (auto-selected for this small slab).
    out_fused = jax.block_until_ready(ca_layer(x, w1, w2))
    assert out_fused.shape == (B, C, H, W)
    assert jnp.allclose(out_fused, ref, atol=1e-5, rtol=1e-5)

    # Tiled two-pass path (forced, small spatial tile): exercises the
    # accumulate-then-(excite+scale) pipeline, HW % tile == 0 case.
    out_tiled = jax.block_until_ready(
        ca_layer(x, w1, w2, mode="tiled", spatial_tile=128))
    assert jnp.allclose(out_tiled, ref, atol=1e-5, rtol=1e-5)

    # Non-128-aligned spatial size: fused path with full-HW (non-lane-dense)
    # block — no pad/slice round-trips.
    x2 = jax.random.normal(kx2, (B, C, 10, 10), dtype=jnp.float32)
    ref2 = jax.block_until_ready(ca_layer_ref(x2, w1, w2))
    out2 = jax.block_until_ready(ca_layer(x2, w1, w2))
    assert jnp.allclose(out2, ref2, atol=1e-5, rtol=1e-5)

    # Non-128-aligned spatial size, tiled path: exercises the in-kernel ragged
    # tail mask in the reduce and the Pallas-masked edge store in pass 2.
    out2_tiled = jax.block_until_ready(
        ca_layer(x2, w1, w2, mode="tiled", spatial_tile=128))
    assert jnp.allclose(out2_tiled, ref2, atol=1e-5, rtol=1e-5)

    print("KERNEL_OK")
</pallas_src>

<mosaic_0001>
module attributes {stable_mosaic.version = 11 : i64} {
  func.func @_ca_fused_kernel(%arg0: i32, %arg1: memref<1x32x256xf32, #tpu.memory_space<vmem>>, %arg2: memref<2x32xf32, #tpu.memory_space<vmem>>, %arg3: memref<32x2xf32, #tpu.memory_space<vmem>>, %arg4: memref<1x32x256xf32, #tpu.memory_space<vmem>>) attributes {dimension_semantics = [#tpu.dimension_semantics<parallel>], iteration_bounds = array<i64: 2>, scalar_prefetch = 0 : i64, scratch_operands = 0 : i64, tpu.core_type = #tpu.core_type<tc>, window_params = [{transform_indices = @transform_0, window_bounds = array<i64: 1, 32, 256>}, {pipeline_mode = #tpu.pipeline_mode<synchronous>, transform_indices = @transform_1, window_bounds = array<i64: 2, 32>}, {pipeline_mode = #tpu.pipeline_mode<synchronous>, transform_indices = @transform_2, window_bounds = array<i64: 32, 2>}, {transform_indices = @transform_3, window_bounds = array<i64: 1, 32, 256>}]} {
    %c0 = arith.constant 0 : index
    %c0_0 = arith.constant 0 : index
    %c0_1 = arith.constant 0 : index
    %0 = vector.load %arg1[%c0, %c0_0, %c0_1] : memref<1x32x256xf32, #tpu.memory_space<vmem>>, vector<1x32x256xf32>
    %cst = arith.constant dense<0.000000e+00> : vector<1x32xf32>
    %1 = vector.multi_reduction <add>, %0, %cst [2] : vector<1x32x256xf32> to vector<1x32xf32>
    %cst_2 = arith.constant 3.906250e-03 : f32
    %2 = vector.broadcast %cst_2 : f32 to vector<1x32xf32>
    %3 = arith.mulf %1, %2 : vector<1x32xf32>
    %c0_3 = arith.constant 0 : index
    %c0_4 = arith.constant 0 : index
    %4 = vector.load %arg2[%c0_3, %c0_4] : memref<2x32xf32, #tpu.memory_space<vmem>>, vector<2x32xf32>
    %c0_5 = arith.constant 0 : index
    %c0_6 = arith.constant 0 : index
    %5 = vector.load %arg3[%c0_5, %c0_6] : memref<32x2xf32, #tpu.memory_space<vmem>>, vector<32x2xf32>
    %6 = vector.shape_cast %4 : vector<2x32xf32> to vector<1x2x32xf32>
    %7 = vector.shape_cast %3 : vector<1x32xf32> to vector<1x1x32xf32>
    %8 = vector.broadcast %7 : vector<1x1x32xf32> to vector<1x2x32xf32>
    %9 = arith.mulf %6, %8 : vector<1x2x32xf32>
    %cst_7 = arith.constant dense<0.000000e+00> : vector<1x2xf32>
    %10 = vector.multi_reduction <add>, %9, %cst_7 [2] : vector<1x2x32xf32> to vector<1x2xf32>
    %cst_8 = arith.constant 0.000000e+00 : f32
    %11 = vector.broadcast %cst_8 : f32 to vector<1x2xf32>
    %12 = arith.maximumf %10, %11 : vector<1x2xf32>
    %13 = vector.shape_cast %5 : vector<32x2xf32> to vector<1x32x2xf32>
    %14 = vector.shape_cast %12 : vector<1x2xf32> to vector<1x1x2xf32>
    %15 = vector.broadcast %14 : vector<1x1x2xf32> to vector<1x32x2xf32>
    %16 = arith.mulf %13, %15 : vector<1x32x2xf32>
    %cst_9 = arith.constant dense<0.000000e+00> : vector<1x32xf32>
    %17 = vector.multi_reduction <add>, %16, %cst_9 [2] : vector<1x32x2xf32> to vector<1x32xf32>
    %18 = arith.negf %17 : vector<1x32xf32>
    %19 = math.exp %18 : vector<1x32xf32>
    %cst_10 = arith.constant 1.000000e+00 : f32
    %20 = vector.broadcast %cst_10 : f32 to vector<1x32xf32>
    %21 = arith.addf %20, %19 : vector<1x32xf32>
    %22 = arith.divf %20, %21 : vector<1x32xf32>
    %23 = vector.shape_cast %22 : vector<1x32xf32> to vector<1x32x1xf32>
    %24 = vector.broadcast %23 : vector<1x32x1xf32> to vector<1x32x256xf32>
    %25 = arith.mulf %0, %24 : vector<1x32x256xf32>
    %c0_11 = arith.constant 0 : index
    %c0_12 = arith.constant 0 : index
    %c0_13 = arith.constant 0 : index
    %26 = vector.load %arg4[%c0_11, %c0_12, %c0_13] : memref<1x32x256xf32, #tpu.memory_space<vmem>>, vector<1x32x256xf32>
    tpu.vector_store %arg4[%c0_11, %c0_12, %c0_13], %25 {strides = array<i32>} : memref<1x32x256xf32, #tpu.memory_space<vmem>>, vector<1x32x256xf32>,
    return
  }
  func.func @transform_0(%arg0: i32) -> (i32, i32, i32) {
    %c0_i32 = arith.constant 0 : i32
    %c0_i32_0 = arith.constant 0 : i32
    %c0_i32_1 = arith.constant 0 : i32
    return %arg0, %c0_i32, %c0_i32_0 : i32, i32, i32
  }
  func.func @transform_1(%arg0: i32) -> (i32, i32) {
    %c0_i32 = arith.constant 0 : i32
    %c0_i32_0 = arith.constant 0 : i32
    %c0_i32_1 = arith.constant 0 : i32
    return %c0_i32, %c0_i32_0 : i32, i32
  }
  func.func @transform_2(%arg0: i32) -> (i32, i32) {
    %c0_i32 = arith.constant 0 : i32
    %c0_i32_0 = arith.constant 0 : i32
    %c0_i32_1 = arith.constant 0 : i32
    return %c0_i32, %c0_i32_0 : i32, i32
  }
  func.func @transform_3(%arg0: i32) -> (i32, i32, i32) {
    %c0_i32 = arith.constant 0 : i32
    %c0_i32_0 = arith.constant 0 : i32
    %c0_i32_1 = arith.constant 0 : i32
    return %arg0, %c0_i32, %c0_i32_0 : i32, i32, i32
  }
}

</mosaic_0001>

<bundles_post_ra>
// kernel: tpu_custom_call.1
= control target key start
LH: loop header
LB: loop body
LE: loop exit
PB: predicated region body
PF: predicated region fallthrough
CT: control target
= control target key end

     0   :  { %8 = vsyncpa [#allocation3], 0  ;;  %s829_s0 = inlined_call_operand.hbm [shape: f32[2,32,256], index: 0, kind: input, shape index: {}]   ;;  %s830_s1 = inlined_call_operand.vmem [shape: f32[2,32], index: 1, kind: input, shape index: {}]   ;;  %s831_s2 = inlined_call_operand.vmem [shape: f32[32,2], index: 2, kind: input, shape index: {}]   ;;  %s832_s3 = inlined_call_operand.hbm [shape: f32[2,32,256], index: 3, kind: output, shape index: {}]  }
   0x1   :  { %10 = vsyncpa [#allocation3 + $0x1], 0 }
   0x2   :  { %11 = vsyncpa [#allocation4], 0 }
   0x3   :  { %13 = vsyncpa [#allocation4 + $0x1], 0  ;;  %s624_s12 = smov 0   ;;  %s626_s13 = smov 0  }
   0x4   :  { %s628_s14 = smov 0   ;;  %s630_s15 = smov 0  }
   0x5 LB: > { %s645_s16 = sadd.s32 4294967295, %s596_s15   ;;  %s418_s17 = sadd.s32 4294967294, %s596_s15   ;;  %s596_s15 = sphi %s630_s15, %s847_s15   ;;  %s592_s14 = sphi %s628_s14, %s846_s14   ;;  %s588_s13 = sphi %s626_s13, %s845_s13   ;;  %s584_s12 = sphi %s624_s12, %s844_s12  }
   0x6   : > { %s649_s18 = sadd.s32 1, %s596_s15   ;;  %s26_s19 = sadd.s32 1, %s592_s14 }
   0x7   : > { %s23_s20 = ssub.s32 %s596_s15, %s649_s18  ;;  %p33_p0 = scmp.ne.s32.totalorder %s592_s14, %s588_s13 }
   0x8   : > { %p24_p1 = scmp.eq.s32.totalorder %s23_s20, 0  ;;  %p34_p2 = scmp.eq.s32.totalorder %s596_s15, 0 }
   0x9   : > { %p39_p3 = scmp.ne.s32.totalorder %s588_s13, %s584_s12  ;;  %p40_p4 = scmp.eq.s32.totalorder %s645_s16, 0 }
   0xa   : > { %s661_s21 = scalar_select %p24_p1, %s592_s14, %s26_s19  }
   0xb   : > { %p663_p5 = por %p34_p2, %p33_p0  ;;  %p667_p6 = por %p40_p4, %p39_p3 }
   0xc   : > { %p105_p7 = scmp.eq.s32.totalorder %s645_s16, 1  ;;  %p111_p8 = scmp.eq.s32.totalorder %s418_s17, 1 }
   0xd   : > { %s836_s23 = scalar_select %p667_p6, 1, 0 }
   0xe   : > { %p450_p10 = scmp.lt.s32.totalorder %s596_s15, 2  ;;  %p674_p11 = por %p105_p7, %p33_p0 }
   0xf   : > { %p678_p12 = por %p111_p8, %p39_p3  ;;  %s137_s26 = sand.u32 1, %s592_s14  }
  0x10   : > { %s837_s24 = scalar_select %p674_p11, 1, 0 }
  0x11   : > { %s838_s25 = scalar_select %p678_p12, 1, 0 }
  0x12   : > { %s436_s27 = sshll.u32 %s596_s15, 10  ;;  %s421_s28 = sshll.u32 %s137_s26, 6 }
  0x13   : > { %s687_s4 = scalar_lea.hbm %s829_s0, %s436_s27  ;;  %s141_s5 = scalar_lea.vmem [#allocation2], %s421_s28 }
  0x14   : > { %s148_s6 = sshll.u32 %s141_s5, 4  ;;  %p691_p13 = pnand %p450_p10, %p663_p5  ;;  %s695_s6 = int_to_ptr.vmem [resolvable:$true] %s148_s6 }
  0x15   : > { %s697_s8 = scalar_lea.sflag [#allocation3], %s137_s26  ;;  %s504_s9 = scalar_lea.hbm %s687_s4, 1024 }
  0x16   : > { %p505_p0 = scmp.ne.s32.totalorder %s687_s4, %s504_s9  ;;  %p506_p1 = pneg %p691_p13 }
  0x17   : > { %s509_s17 = scalar_lea.hbm %s829_s0, 2048  ;;  %p510_p4 = scmp.lt.s32.totalorder %s687_s4, %s829_s0 }
  0x18   : > { %p507_p2 = pnand %p506_p1, %p505_p0  ;;  %p511_p5 = scmp.lt.s32.totalorder %s509_s17, %s504_s9 }
  0x1a   : > { %p508_p3 = pneg %p507_p2  ;;  %p512_p7 = por %p511_p5, %p510_p4 }
  0x1c   : > { %p513_p8 = pnand %p512_p7, %p508_p3 }
  0x1e   : > { %516 = shalt.err (!%p513_p8)
}
  0x1f   : > { %s517_s22 = scalar_lea.vmem %s695_s6, 1024  ;;  %s598_s26 = smov [#allocation2]  }
  0x20   : > { %p518_p10 = scmp.ne.s32.totalorder %s695_s6, %s517_s22  ;;  %s522_s27 = sshll.u32 %s598_s26, 4  ;;  %s523_s27 = int_to_ptr.vmem [resolvable:$false] %s522_s27 }
  0x21   : > { %s524_s28 = scalar_lea.vmem %s523_s27, 2048  ;;  %p525_p2 = scmp.lt.s32.totalorder %s695_s6, %s523_s27 }
  0x22   : > { %p520_p9 = pnand %p518_p10, %p506_p1  ;;  %p526_p12 = scmp.lt.s32.totalorder %s524_s28, %s517_s22 }
  0x24   : > { %p521_p0 = pneg %p520_p9  ;;  %p527_p11 = por %p526_p12, %p525_p2 }
  0x26   : > { %p528_p6 = pnand %p527_p11, %p521_p0 }
  0x28   : > { %531 = shalt.err (!%p528_p6)
}
  0x29   : > { %s599_s29 = smov 256   ;;  %s600_s30 = smov 16  }
  0x2a   : > { %445 = dma.hbm_to_vmem [thread:$0]  (!%p691_p13), %s687_s4, 1024, %s695_s6, %s697_s8, %s599_s29, %s599_s29, %s600_s30  }
  0x2b   : > { %p424_p9 = scmp.ge.s32.totalorder %s596_s15, 1  ;;  %p156_p1 = scmp.lt.s32.totalorder %s596_s15, 3 }
  0x2d   : > { %p157_p3 = pnand %p424_p9, %p156_p1 }
  0x2e   : > { %s721_s5 = sand.u32 (!%p157_p3), 1, %s588_s13   ;;  %p840_p6 = scmp.ne.s32.totalorder (!%p157_p3), %s836_s23, 0 }
  0x2f   : > { %160 = sbr.rel (%p157_p3) target bundleno = 544 (0x220), region = 32  ;;  %s425_s9 = sshll.u32 (!%p157_p3), %s721_s5, 6 }
  0x30   : > { %s163_s10 = scalar_lea.sflag (!%p157_p3), [#allocation3], %s721_s5  ;;  %s166_s11 = scalar_lea.vmem (!%p157_p3), [#allocation2], %s425_s9 }
  0x34   : > { %575 = dma.done.wait (%p840_p6), %s163_s10, 1024  }
  0x35   : > { %577 = vsyncadd (%p840_p6), %s163_s10, 4294966272  ;;  %v731_v0 = vld [vmem:[%s166_s11] sm:$0xff]  ;;  %v733_v1 = vld [vmem:[%s166_s11 + $0x8] sm:$0xff]  ;;  %v222_v12 = vlaneseq  ;;  %vm233_vm0 = vcmask 130112   ;;  %vm240_vm1 = vcmask 195712   ;;  %vm247_vm2 = vcmask 261312  }
  0x36   : > { %v735_v2 = vld [vmem:[%s166_s11 + $0x20] sm:$0xff]  ;;  %v197_v3 = vadd.f32 %v733_v1, %v731_v0  ;;  %v739_v4 = vld [vmem:[%s166_s11 + $0x28] sm:$0xff]  ;;  %v741_v5 = vld [vmem:[%s166_s11 + $0x10] sm:$0xff]  ;;  %vm251_vm3 = vcmask 254976   ;;  %vm278_vm4 = vcmask 15360   ;;  %s437_s27 = sshll.u32 %s645_s16, 10 }
  0x37   : > { %v743_v6 = vld [vmem:[%s166_s11 + $0x18] sm:$0xff]  ;;  %v203_v7 = vadd.f32 %v739_v4, %v735_v2  ;;  %v747_v8 = vld [vmem:[%s166_s11 + $0x30] sm:$0xff]  ;;  %v223_v13 = vand.u32 127, %v222_v12  ;;  %v225_v14 = vshrl.u32 %v222_v12, 7  ;;  %v213_v35 = vld [vmem:[%s830_s1] sm:$0x3] }
  0x38   : > { %v749_v9 = vld [vmem:[%s166_s11 + $0x38] sm:$0xff]  ;;  %198 = vadd.xlane.f32.xlu0 %v197_v3  ;;  %v200_v10 = vadd.f32 %v743_v6, %v741_v5  ;;  %v215_v42 = vld [vmem:[%s831_s2 + $0x8] sm:$0xff]  ;;  %v214_v43 = vld [vmem:[%s831_s2] sm:$0xff]  ;;  %s188_s28 = scalar_lea.vmem [#allocation5], %s425_s9  ;;  %s782_s11 = scalar_lea.hbm %s832_s3, %s437_s27 }
  0x39   : > { %204 = vadd.xlane.f32.xlu1 %v203_v7  ;;  %v206_v11 = vadd.f32 %v749_v9, %v747_v8  ;;  %v228_v15 = vadd.s32 4294967288, %v223_v13  ;;  %v235_v17 = vadd.s32 4294967280, %v223_v13  ;;  %v242_v18 = vadd.s32 4294967272, %v223_v13  ;;  %v217_v45 = vld [vmem:[%s831_s2 + $0x18] sm:$0xff]  ;;  %v216_v46 = vld [vmem:[%s831_s2 + $0x10] sm:$0xff]  ;;  %s345_s29 = sshll.u32 %s188_s28, 4  ;;  %s784_s29 = int_to_ptr.vmem [resolvable:$true] %s345_s29 }
  0x3a   : > { %v226_v20 = vsub.s32 %v223_v13, %v225_v14  ;;  %s332_s16 = scalar_lea.sflag [#allocation4], %s721_s5  ;;  %s532_s9 = scalar_lea.vmem %s784_s29, 1024 }
  0x3b   : > { %v231_v22 = vsub.s32 %v228_v15, %v225_v14  ;;  %v238_v23 = vsub.s32 %v235_v17, %v225_v14  ;;  %v245_v26 = vsub.s32 %v242_v18, %v225_v14  ;;  %p533_p11 = scmp.ne.s32.totalorder %s784_s29, %s532_s9  ;;  %p841_p12 = scmp.ne.s32.totalorder %s837_s24, 0 }
  0x3c   : > { %201 = vadd.xlane.f32.xlu0 %v200_v10  ;;  %s601_s23 = smov [#allocation5]  }
  0x3d   : > { %207 = vadd.xlane.f32.xlu1 %v206_v11  ;;  %p534_p13 = pnand %p533_p11, %p841_p12  ;;  %s536_s4 = sshll.u32 %s601_s23, 4  ;;  %s537_s4 = int_to_ptr.vmem [resolvable:$false] %s536_s4 }
  0x3e   : > { %s538_s6 = scalar_lea.vmem %s537_s4, 2048  ;;  %p539_p5 = scmp.lt.s32.totalorder %s784_s29, %s537_s4 }
  0x3f   : > { %p535_p4 = pneg %p534_p13  ;;  %p540_p7 = scmp.lt.s32.totalorder %s538_s6, %s532_s9 }
  0x41   : > { %p541_p8 = por %p540_p7, %p539_p5 }
  0x43   : > { %p542_p10 = pnand %p541_p8, %p535_p4 }
  0xc1   : > { %v199_v16 = vpop.xlane.xlu0 %198 }
  0xc2   : > { %v205_v19 = vpop.xlane.xlu1 %204  ;;  %v209_v21 = vmul.f32 0.00390625, %v199_v16 }
  0xc3   : > { %v211_v24 = vmul.f32 0.00390625, %v205_v19 }
  0xc4   : > { %v227_v30 = vrot.slane %v209_v21, %v226_v20 }
  0xc5   : > { %v202_v25 = vpop.xlane.xlu0 %201  ;;  %v239_v32 = vrot.slane %v211_v24, %v238_v23 }
  0xc6   : > { %v210_v27 = vmul.f32 0.00390625, %v202_v25  ;;  %v208_v28 = vpop.xlane.xlu1 %207 }
  0xc7   : > { %v212_v29 = vmul.f32 0.00390625, %v208_v28 }
  0xc8   : > { %v232_v31 = vrot.slane %v210_v27, %v231_v22 }
  0xc9   : > { %v246_v33 = vrot.slane %v212_v29, %v245_v26 }
  0xca   : > { %v234_v34 = vsel %vm233_vm0, %v232_v31, %v227_v30 }
  0xcb   : > { %v241_v36 = vsel %vm240_vm1, %v239_v32, %v234_v34 }
  0xcc   : > { %v248_v37 = vsel %vm247_vm2, %v246_v33, %v241_v36 }
  0xcd   : > { %v250_v38 = vmul.f32 %v248_v37, %v213_v35 }
  0xcf   : > { %v252_v39 = vsel %vm251_vm3, %v250_v38, 0.0 }
  0xd0   : > { %253 = vadd.xlane.f32.xlu0 %v252_v39 }
 0x159   : > { %v254_v40 = vpop.xlane.xlu0 %253 }
 0x15a   : > { %v255_v41 = vmax.f32 %v254_v40, 0.0 }
 0x15c   : > { %v260_v44 = vrot.slane %v255_v41, %v226_v20 }
 0x15e   : > { %v275_v47 = vmul.f32 %v260_v44, %v215_v42  ;;  %v274_v48 = vmul.f32 %v260_v44, %v214_v43  ;;  %v277_v51 = vmul.f32 %v260_v44, %v217_v45  ;;  %v276_v52 = vmul.f32 %v260_v44, %v216_v46 }
 0x160   : > { %v282_v49 = vsel %vm278_vm4, %v275_v47, 0.0  ;;  %v279_v50 = vsel %vm278_vm4, %v274_v48, 0.0  ;;  %v288_v53 = vsel %vm278_vm4, %v277_v51, 0.0  ;;  %v285_v54 = vsel %vm278_vm4, %v276_v52, 0.0 }
 0x161   : > { %283 = vadd.xlane.f32.xlu0 %v282_v49  ;;  %280 = vadd.xlane.f32.xlu1 %v279_v50 }
 0x165   : > { %289 = vadd.xlane.f32.xlu0 %v288_v53  ;;  %286 = vadd.xlane.f32.xlu1 %v285_v54 }
 0x1ea   : > { %v284_v55 = vpop.xlane.xlu0 %283  ;;  %v281_v56 = vpop.xlane.xlu1 %280 }
 0x1eb   : > { %v428_v57 = vmul.f32 -1.442695, %v284_v55  ;;  %v427_v58 = vmul.f32 -1.442695, %v281_v56 }
 0x1ed   : > { %488 = vpow2.f32 %v428_v57 }
 0x1ee   : > { %490 = vpow2.f32 %v427_v58  ;;  %v290_v59 = vpop.xlane.xlu0 %289  ;;  %v287_v60 = vpop.xlane.xlu1 %286 }
 0x1ef   : > { %v430_v61 = vmul.f32 -1.442695, %v290_v59  ;;  %v429_v62 = vmul.f32 -1.442695, %v287_v60 }
 0x1f1   : > { %492 = vpow2.f32 %v430_v61 }
 0x1f2   : > { %494 = vpow2.f32 %v429_v62 }
 0x1fa   : > { %v489_v63 = vpop.eup %488 }
 0x1fb   : > { %v491_v3 = vpop.eup %490  ;;  %v304_v7 = vadd.f32 1.0, %v489_v63 }
 0x1fc   : > { %v303_v10 = vadd.f32 1.0, %v491_v3 }
 0x1fd   : > { %496 = vrcp.f32 %v304_v7 }
 0x1fe   : > { %v493_v11 = vpop.eup %492  ;;  %498 = vrcp.f32 %v303_v10 }
 0x1ff   : > { %v495_v12 = vpop.eup %494  ;;  %v306_v13 = vadd.f32 1.0, %v493_v11 }
 0x200   : > { %v305_v14 = vadd.f32 1.0, %v495_v12 }
 0x201   : > { %500 = vrcp.f32 %v306_v13 }
 0x202   : > { %502 = vrcp.f32 %v305_v14 }
 0x20a   : > { %v497_v15 = vpop.eup %496 }
 0x20b   : > { %v499_v16 = vpop.eup %498  ;;  %v317_v17 = vmul.f32 %v497_v15, %v741_v5  ;;  %v318_v18 = vmul.f32 %v497_v15, %v743_v6 }
 0x20c   : > { %v315_v19 = vmul.f32 %v499_v16, %v731_v0  ;;  %v316_v20 = vmul.f32 %v499_v16, %v733_v1 }
 0x20d   : > { %325 = vst [vmem:[%s188_s28 + $0x10] sm:$0xff] %v317_v17  ;;  %326 = vst [vmem:[%s188_s28 + $0x18] sm:$0xff] %v318_v18 }
 0x20e   : > { %v501_v21 = vpop.eup %500  ;;  %323 = vst [vmem:[%s188_s28] sm:$0xff] %v315_v19  ;;  %324 = vst [vmem:[%s188_s28 + $0x8] sm:$0xff] %v316_v20 }
 0x20f   : > { %v503_v22 = vpop.eup %502  ;;  %v321_v5 = vmul.f32 %v501_v21, %v747_v8  ;;  %v322_v6 = vmul.f32 %v501_v21, %v749_v9 }
 0x210   : > { %v319_v0 = vmul.f32 %v503_v22, %v735_v2  ;;  %v320_v1 = vmul.f32 %v503_v22, %v739_v4 }
 0x211   : > { %329 = vst [vmem:[%s188_s28 + $0x30] sm:$0xff] %v321_v5  ;;  %330 = vst [vmem:[%s188_s28 + $0x38] sm:$0xff] %v322_v6 }
 0x212   : > { %327 = vst [vmem:[%s188_s28 + $0x20] sm:$0xff] %v319_v0  ;;  %328 = vst [vmem:[%s188_s28 + $0x28] sm:$0xff] %v320_v1 }
 0x213   : > { %545 = shalt.err (!%p542_p10)
}
 0x214   : > { %s546_s7 = scalar_lea.hbm %s782_s11, 1024  ;;  %s550_s19 = scalar_lea.hbm %s832_s3, 2048 }
 0x215   : > { %p547_p0 = scmp.ne.s32.totalorder %s782_s11, %s546_s7  ;;  %p551_p1 = scmp.lt.s32.totalorder %s782_s11, %s832_s3 }
 0x216   : > { %p552_p3 = scmp.lt.s32.totalorder %s550_s19, %s546_s7 }
 0x217   : > { %p548_p2 = pnand %p547_p0, %p841_p12 }
 0x218   : > { %p553_p6 = por %p552_p3, %p551_p1 }
 0x219   : > { %p549_p9 = pneg %p548_p2 }
 0x21b   : > { %p554_p11 = pnand %p553_p6, %p549_p9 }
 0x21d   : > { %557 = shalt.err (!%p554_p11)
}
 0x21e   : > { %s602_s26 = smov 256   ;;  %s603_s27 = smov 16  }
 0x21f   : > { %440 = dma.vmem_to_hbm [thread:$0]  (%p841_p12), %s784_s29, 1024, %s782_s11, %s332_s16, %s602_s26, %s602_s26, %s603_s27  }
 0x220 PF: > { %s360_s28 = sand.u32 1, %s584_s12   ;;  %p842_p13 = scmp.ne.s32.totalorder %s838_s25, 0 }
 0x221   : > { %p843_p4 = scmp.ge.s32.totalorder %s596_s15, 2  ;;  %s361_s30 = scalar_lea.sflag [#allocation4], %s360_s28 }
 0x223   : > { %p447_p5 = pnand %p843_p4, %p842_p13 }
 0x225   : > { %p448_p7 = pneg %p447_p5 }
 0x227   : > { %579 = dma.done.wait (%p448_p7), %s361_s30, 1024  }
 0x228   : > { %581 = vsyncadd (%p448_p7), %s361_s30, 4294966272  ;;  %p16_p8 = scmp.ge.s32.totalorder %s649_s18, 4   ;;  %s844_s12 = smov %s588_s13 }
 0x229   : > { %s845_s13 = smov %s592_s14  ;;  %s846_s14 = smov %s661_s21 }
 0x22a   : > { %s847_s15 = smov %s649_s18  ;;  %18 = sbr.rel (!%p16_p8) target bundleno = 5 (0x5), region = 77 }
 0x22f   :  { %366 = vsyncpa [#allocation3], 1 }
 0x230   :  { %368 = vsyncpa [#allocation3 + $0x1], 1 }
 0x231   :  { %369 = vsyncpa [#allocation4], 1 }
 0x232   :  { %371 = vsyncpa [#allocation4 + $0x1], 1 }

</bundles_post_ra>
